<compile_context>
chip_gen: v5e
topology: v5e:2x2
jax: 0.10.0
libtpu: 0.0.40
codegen_flags: <defaults>
</compile_context>

<pallas_src>
import functools
from typing import NamedTuple

import jax
import jax.numpy as jnp
from jax.experimental import pallas as pl
from jax.experimental.pallas import tpu as pltpu


def _lstm_kernel(ids_ref, xtab_ref, whh_ref, wfc_ref, bfc_ref, out_ref,
                 *, hidden_dim, batch, seq_len):
    H = hidden_dim
    Bp = batch                       # padded batch (multiple of 8 sublanes)
    T = seq_len
    TB = ids_ref.shape[0]            # T * Bp
    Vp = xtab_ref.shape[0]           # padded vocab (multiple of 128 lanes)

    # ---- hoisted input path: one one-hot build + ONE MXU matmul for all (t, b) ----
    # x_tab rows already contain emb[v] @ W_ih.T + (b_ih + b_hh) (gate-permuted),
    # so this single matmul yields the full input-side + bias contribution per step.
    ids = ids_ref[...]                                                  # (T*Bp, 1) int32
    iota_v = jax.lax.broadcasted_iota(jnp.int32, (TB, Vp), 1)           # (T*Bp, Vp)
    onehot = (iota_v == ids).astype(jnp.float32)                        # (T*Bp, Vp)
    xg_all = jnp.dot(onehot, xtab_ref[...],
                     preferred_element_type=jnp.float32)                # (T*Bp, 4H)

    # ---- loop-invariant hoists ----
    w_hh = whh_ref[...]                                                 # (H, 4H)

    h = jnp.zeros((Bp, H), jnp.float32)
    c = jnp.zeros((Bp, H), jnp.float32)

    # ---- serial recurrence: 1 MXU op + 2 transcendental slabs per step ----
    # T is a small static trace-time constant -> Python-unrolled (keeps the xg_all
    # slab slices static and contiguous: one 8-sublane vreg each).
    # TODO(synk): verify from the bundle dump that Mosaic keeps the (H,4H) RHS staged
    # in the MXU across the unrolled steps; if it re-pushes the weights every step,
    # switch to pltpu.matmul_push_rhs / matmul_acc_lhs / matmul_pop to push it once.
    for t in range(T):
        pre = (xg_all[t * Bp:(t + 1) * Bp, :]
               + jnp.dot(h, w_hh, preferred_element_type=jnp.float32))  # (Bp, 4H)
        # gate columns pre-permuted to [i, f, o | g]:
        sg = jax.nn.sigmoid(pre[:, :3 * H])                             # one EUP slab
        i_g = sg[:, 0 * H:1 * H]
        f_g = sg[:, 1 * H:2 * H]
        o_g = sg[:, 2 * H:3 * H]
        g_g = jnp.tanh(pre[:, 3 * H:4 * H])                             # one EUP slab
        c = f_g * c + i_g * g_g
        h = o_g * jnp.tanh(c)

    # ---- fc on the last hidden state; lane-dense (Bp, Vp) output store ----
    out_ref[...] = (jnp.dot(h, wfc_ref[...], preferred_element_type=jnp.float32)
                    + bfc_ref[...])


def _round_up(x, m):
    return (x + m - 1) // m * m


class PreparedParams(NamedTuple):
    """Kernel-ready parameters. Build ONCE with prepare_params(), reuse every call."""
    x_tab: jax.Array    # (Vp, 4H)  emb @ W_ih[perm].T + (b_ih+b_hh)[perm], vocab-padded
    w_hh_t: jax.Array   # (H, 4H)   gate-permuted, transposed
    w_fc_p: jax.Array   # (H, Vp)   transposed, vocab-padded
    b_fc_p: jax.Array   # (1, Vp)   vocab-padded


def prepare_params(params):
    """One-time parameter preparation (fold embedding + bias, permute gates, pad).

    Call once per parameter set; per-forward work is then just id padding + the kernel.
    """
    emb, w_ih, w_hh, b_ih, b_hh, w_fc, b_fc = (
        params["emb"], params["w_ih"], params["w_hh"],
        params["b_ih"], params["b_hh"], params["w_fc"], params["b_fc"])

    V, _ = emb.shape
    H = w_hh.shape[1]
    Vp = _round_up(max(V, 128), 128)    # pad vocab to full lanes

    # Gate-block permutation: PyTorch order [i, f, g, o] -> kernel order [i, f, o, g]
    perm = jnp.concatenate([jnp.arange(0, 2 * H),
                            jnp.arange(3 * H, 4 * H),
                            jnp.arange(2 * H, 3 * H)])

    # Fold embedding + merged LSTM bias into one table:
    #   x_tab[v] = emb[v] @ W_ih[perm].T + (b_ih + b_hh)[perm]
    # (one-time cost -> use HIGHEST precision for closer parity with f32 PyTorch)
    bias = (b_ih + b_hh)[perm].astype(jnp.float32)                       # (4H,)
    x_tab = jnp.dot(emb.astype(jnp.float32),
                    jnp.transpose(w_ih[perm]).astype(jnp.float32),
                    precision=jax.lax.Precision.HIGHEST) + bias[None, :]  # (V, 4H)
    # Padded vocab rows are zero (no bias) — harmless: no token id maps to them.
    x_tab_p = jnp.zeros((Vp, 4 * H), jnp.float32).at[:V].set(x_tab)

    w_hh_t = jnp.transpose(w_hh[perm]).astype(jnp.float32)               # (H, 4H)

    w_fc_p = jnp.zeros((H, Vp), jnp.float32).at[:, :V].set(
        jnp.transpose(w_fc).astype(jnp.float32))                         # (H, Vp)
    b_fc_p = jnp.zeros((1, Vp), jnp.float32).at[:, :V].set(
        b_fc.astype(jnp.float32))                                        # (1, Vp)

    return PreparedParams(x_tab_p, w_hh_t, w_fc_p, b_fc_p)


@functools.partial(jax.jit, static_argnames=("vocab_size",))
def number_prediction_forward(x_ids, prepared: PreparedParams, *, vocab_size):
    """x_ids: (B, T) int32 token ids. Returns logits (B, vocab_size) float32."""
    x_tab, w_hh_t, w_fc_p, b_fc_p = prepared
    B, T = x_ids.shape
    H = w_hh_t.shape[0]
    Vp = x_tab.shape[0]
    Bp = _round_up(max(B, 8), 8)        # pad batch to full sublanes

    # Padded batch rows use token id 0: a real vocab row, so activations stay finite
    # and bounded (sigmoid/tanh); those rows are sliced off below. Do NOT change the
    # padding value to something outside [0, V) without also padding x_tab accordingly.
    x_pad = jnp.zeros((Bp, T), jnp.int32).at[:B].set(x_ids.astype(jnp.int32))
    # Time-major layout so each step's slab is 8 contiguous sublanes in xg_all.
    ids_flat = jnp.transpose(x_pad).reshape(T * Bp, 1)                   # (T*Bp, 1)

    vmem = pl.BlockSpec(memory_space=pltpu.MemorySpace.VMEM)
    kernel = functools.partial(_lstm_kernel, hidden_dim=H, batch=Bp, seq_len=T)

    # No grid / no tiling: everything (~100 KB, x_tab dominating) is VMEM-resident.
    # TODO(synk): if vocab_size or hidden_dim grow, tile x_tab/w_fc over Vp with a grid
    # (use ~half the v6e tile on v7x's 64 MiB VMEM); if batch grows to Bp>=16 on v7x,
    # add a leading 'parallel' batch-halves grid axis to use both TensorCores.
    out = pl.pallas_call(
        kernel,
        out_shape=jax.ShapeDtypeStruct((Bp, Vp), jnp.float32),
        in_specs=[vmem] * 5,
        out_specs=vmem,
    )(ids_flat, x_tab, w_hh_t, w_fc_p, b_fc_p)

    return out[:B, :vocab_size]


def _reference_forward(x_ids, params):
    """Pure-JAX reference mirroring the PyTorch module, for a sanity check."""
    emb = params["emb"]
    w_ih, w_hh = params["w_ih"], params["w_hh"]
    b_ih, b_hh = params["b_ih"], params["b_hh"]
    w_fc, b_fc = params["w_fc"], params["b_fc"]
    B, T = x_ids.shape
    H = w_hh.shape[1]
    x_emb = emb[x_ids]                                       # (B, T, E)
    h = jnp.zeros((B, H), jnp.float32)
    c = jnp.zeros((B, H), jnp.float32)
    for t in range(T):
        gates = x_emb[:, t] @ w_ih.T + b_ih + h @ w_hh.T + b_hh
        i = jax.nn.sigmoid(gates[:, 0 * H:1 * H])
        f = jax.nn.sigmoid(gates[:, 1 * H:2 * H])
        g = jnp.tanh(gates[:, 2 * H:3 * H])
        o = jax.nn.sigmoid(gates[:, 3 * H:4 * H])
        c = f * c + i * g
        h = o * jnp.tanh(c)
    return h @ w_fc.T + b_fc


def init_params(key, vocab_size, embedding_dim, hidden_dim):
    ks = jax.random.split(key, 7)
    H = hidden_dim
    s = 1.0 / jnp.sqrt(H)  # PyTorch LSTM/Linear uniform init scale
    return {
        "emb":  jax.random.normal(ks[0], (vocab_size, embedding_dim), jnp.float32),
        "w_ih": jax.random.uniform(ks[1], (4 * H, embedding_dim), jnp.float32, -s, s),
        "w_hh": jax.random.uniform(ks[2], (4 * H, H), jnp.float32, -s, s),
        "b_ih": jax.random.uniform(ks[3], (4 * H,), jnp.float32, -s, s),
        "b_hh": jax.random.uniform(ks[4], (4 * H,), jnp.float32, -s, s),
        "w_fc": jax.random.uniform(ks[5], (vocab_size, H), jnp.float32, -s, s),
        "b_fc": jax.random.uniform(ks[6], (vocab_size,), jnp.float32, -s, s),
    }


if __name__ == "__main__":
    VOCAB, EMB, HID = 32, 16, 32      # 4*HID = 128 -> one full vreg lane width
    B, T = 2, 8

    key = jax.random.PRNGKey(0)
    k_param, k_x = jax.random.split(key)
    params = init_params(k_param, VOCAB, EMB, HID)
    x = jax.random.randint(k_x, (B, T), 0, VOCAB, dtype=jnp.int32)

    # One-time parameter prep (cached / reused across forward calls).
    prepared = prepare_params(params)
    prepared = jax.tree_util.tree_map(jax.block_until_ready, prepared)

    out = number_prediction_forward(x, prepared, vocab_size=VOCAB)
    out = jax.block_until_ready(out)
    assert out.shape == (B, VOCAB)

    # In-kernel dots intentionally run at default MXU precision (single-pass bf16
    # operands), hence the 2e-2 tolerance against the f32 reference.
    ref = _reference_forward(x, params)
    assert jnp.allclose(out, ref, atol=2e-2, rtol=2e-2), "mismatch vs JAX reference"

    print("KERNEL_OK")
</pallas_src>

<mosaic_0001>
module attributes {stable_mosaic.version = 11 : i64} {
  func.func @_lstm_kernel(%arg0: memref<64x1xi32, #tpu.memory_space<vmem>>, %arg1: memref<128x128xf32, #tpu.memory_space<vmem>>, %arg2: memref<32x128xf32, #tpu.memory_space<vmem>>, %arg3: memref<32x128xf32, #tpu.memory_space<vmem>>, %arg4: memref<1x128xf32, #tpu.memory_space<vmem>>, %arg5: memref<8x128xf32, #tpu.memory_space<vmem>>) attributes {dimension_semantics = [], scalar_prefetch = 0 : i64, scratch_operands = 0 : i64, tpu.core_type = #tpu.core_type<tc>} {
    %c0 = arith.constant 0 : index
    %c0_0 = arith.constant 0 : index
    %0 = vector.load %arg0[%c0, %c0_0] : memref<64x1xi32, #tpu.memory_space<vmem>>, vector<64x1xi32>
    %1 = tpu.iota {dimensions = array<i32: 1>} : vector<64x128xi32>
    %2 = vector.broadcast %0 : vector<64x1xi32> to vector<64x128xi32>
    %3 = arith.cmpi eq, %1, %2 : vector<64x128xi32>
    %4 = arith.extui %3 : vector<64x128xi1> to vector<64x128xi32>
    %5 = arith.sitofp %4 : vector<64x128xi32> to vector<64x128xf32>
    %c0_1 = arith.constant 0 : index
    %c0_2 = arith.constant 0 : index
    %6 = vector.load %arg1[%c0_1, %c0_2] : memref<128x128xf32, #tpu.memory_space<vmem>>, vector<128x128xf32>
    %cst = arith.constant dense<0.000000e+00> : vector<64x128xf32>
    %7 = tpu.matmul %5, %6, %cst {dimension_numbers = #tpu.dot_dimension_numbers<[1], [0], [0], [1], [0, 0, 1, 1], [], []>} : vector<64x128xf32>, vector<128x128xf32>, vector<64x128xf32> -> vector<64x128xf32>
    %c0_3 = arith.constant 0 : index
    %c0_4 = arith.constant 0 : index
    %8 = vector.load %arg2[%c0_3, %c0_4] : memref<32x128xf32, #tpu.memory_space<vmem>>, vector<32x128xf32>
    %cst_5 = arith.constant 0.000000e+00 : f32
    %9 = vector.broadcast %cst_5 : f32 to vector<8x32xf32>
    %cst_6 = arith.constant 0.000000e+00 : f32
    %10 = vector.broadcast %cst_6 : f32 to vector<8x32xf32>
    %11 = vector.extract_strided_slice %7 {offsets = [0, 0], sizes = [8, 128], strides = [1, 1]} : vector<64x128xf32> to vector<8x128xf32>
    %cst_7 = arith.constant dense<0.000000e+00> : vector<8x128xf32>
    %12 = tpu.matmul %9, %8, %cst_7 {dimension_numbers = #tpu.dot_dimension_numbers<[1], [0], [0], [1], [0, 0, 1, 1], [], []>} : vector<8x32xf32>, vector<32x128xf32>, vector<8x128xf32> -> vector<8x128xf32>
    %13 = arith.addf %11, %12 : vector<8x128xf32>
    %14 = vector.extract_strided_slice %13 {offsets = [0, 0], sizes = [8, 96], strides = [1, 1]} : vector<8x128xf32> to vector<8x96xf32>
    %15 = arith.negf %14 : vector<8x96xf32>
    %16 = math.exp %15 : vector<8x96xf32>
    %cst_8 = arith.constant 1.000000e+00 : f32
    %17 = vector.broadcast %cst_8 : f32 to vector<8x96xf32>
    %18 = arith.addf %17, %16 : vector<8x96xf32>
    %19 = arith.divf %17, %18 : vector<8x96xf32>
    %20 = vector.extract_strided_slice %19 {offsets = [0, 0], sizes = [8, 32], strides = [1, 1]} : vector<8x96xf32> to vector<8x32xf32>
    %21 = vector.extract_strided_slice %19 {offsets = [0, 32], sizes = [8, 32], strides = [1, 1]} : vector<8x96xf32> to vector<8x32xf32>
    %22 = vector.extract_strided_slice %19 {offsets = [0, 64], sizes = [8, 32], strides = [1, 1]} : vector<8x96xf32> to vector<8x32xf32>
    %23 = vector.extract_strided_slice %13 {offsets = [0, 96], sizes = [8, 32], strides = [1, 1]} : vector<8x128xf32> to vector<8x32xf32>
    %24 = math.tanh %23 : vector<8x32xf32>
    %25 = arith.mulf %21, %10 : vector<8x32xf32>
    %26 = arith.mulf %20, %24 : vector<8x32xf32>
    %27 = arith.addf %25, %26 : vector<8x32xf32>
    %28 = math.tanh %27 : vector<8x32xf32>
    %29 = arith.mulf %22, %28 : vector<8x32xf32>
    %30 = vector.extract_strided_slice %7 {offsets = [8, 0], sizes = [8, 128], strides = [1, 1]} : vector<64x128xf32> to vector<8x128xf32>
    %cst_9 = arith.constant dense<0.000000e+00> : vector<8x128xf32>
    %31 = tpu.matmul %29, %8, %cst_9 {dimension_numbers = #tpu.dot_dimension_numbers<[1], [0], [0], [1], [0, 0, 1, 1], [], []>} : vector<8x32xf32>, vector<32x128xf32>, vector<8x128xf32> -> vector<8x128xf32>
    %32 = arith.addf %30, %31 : vector<8x128xf32>
    %33 = vector.extract_strided_slice %32 {offsets = [0, 0], sizes = [8, 96], strides = [1, 1]} : vector<8x128xf32> to vector<8x96xf32>
    %34 = arith.negf %33 : vector<8x96xf32>
    %35 = math.exp %34 : vector<8x96xf32>
    %cst_10 = arith.constant 1.000000e+00 : f32
    %36 = vector.broadcast %cst_10 : f32 to vector<8x96xf32>
    %37 = arith.addf %36, %35 : vector<8x96xf32>
    %38 = arith.divf %36, %37 : vector<8x96xf32>
    %39 = vector.extract_strided_slice %38 {offsets = [0, 0], sizes = [8, 32], strides = [1, 1]} : vector<8x96xf32> to vector<8x32xf32>
    %40 = vector.extract_strided_slice %38 {offsets = [0, 32], sizes = [8, 32], strides = [1, 1]} : vector<8x96xf32> to vector<8x32xf32>
    %41 = vector.extract_strided_slice %38 {offsets = [0, 64], sizes = [8, 32], strides = [1, 1]} : vector<8x96xf32> to vector<8x32xf32>
    %42 = vector.extract_strided_slice %32 {offsets = [0, 96], sizes = [8, 32], strides = [1, 1]} : vector<8x128xf32> to vector<8x32xf32>
    %43 = math.tanh %42 : vector<8x32xf32>
    %44 = arith.mulf %40, %27 : vector<8x32xf32>
    %45 = arith.mulf %39, %43 : vector<8x32xf32>
    %46 = arith.addf %44, %45 : vector<8x32xf32>
    %47 = math.tanh %46 : vector<8x32xf32>
    %48 = arith.mulf %41, %47 : vector<8x32xf32>
    %49 = vector.extract_strided_slice %7 {offsets = [16, 0], sizes = [8, 128], strides = [1, 1]} : vector<64x128xf32> to vector<8x128xf32>
    %cst_11 = arith.constant dense<0.000000e+00> : vector<8x128xf32>
    %50 = tpu.matmul %48, %8, %cst_11 {dimension_numbers = #tpu.dot_dimension_numbers<[1], [0], [0], [1], [0, 0, 1, 1], [], []>} : vector<8x32xf32>, vector<32x128xf32>, vector<8x128xf32> -> vector<8x128xf32>
    %51 = arith.addf %49, %50 : vector<8x128xf32>
    %52 = vector.extract_strided_slice %51 {offsets = [0, 0], sizes = [8, 96], strides = [1, 1]} : vector<8x128xf32> to vector<8x96xf32>
    %53 = arith.negf %52 : vector<8x96xf32>
    %54 = math.exp %53 : vector<8x96xf32>
    %cst_12 = arith.constant 1.000000e+00 : f32
    %55 = vector.broadcast %cst_12 : f32 to vector<8x96xf32>
    %56 = arith.addf %55, %54 : vector<8x96xf32>
    %57 = arith.divf %55, %56 : vector<8x96xf32>
    %58 = vector.extract_strided_slice %57 {offsets = [0, 0], sizes = [8, 32], strides = [1, 1]} : vector<8x96xf32> to vector<8x32xf32>
    %59 = vector.extract_strided_slice %57 {offsets = [0, 32], sizes = [8, 32], strides = [1, 1]} : vector<8x96xf32> to vector<8x32xf32>
    %60 = vector.extract_strided_slice %57 {offsets = [0, 64], sizes = [8, 32], strides = [1, 1]} : vector<8x96xf32> to vector<8x32xf32>
    %61 = vector.extract_strided_slice %51 {offsets = [0, 96], sizes = [8, 32], strides = [1, 1]} : vector<8x128xf32> to vector<8x32xf32>
    %62 = math.tanh %61 : vector<8x32xf32>
    %63 = arith.mulf %59, %46 : vector<8x32xf32>
    %64 = arith.mulf %58, %62 : vector<8x32xf32>
    %65 = arith.addf %63, %64 : vector<8x32xf32>
    %66 = math.tanh %65 : vector<8x32xf32>
    %67 = arith.mulf %60, %66 : vector<8x32xf32>
    %68 = vector.extract_strided_slice %7 {offsets = [24, 0], sizes = [8, 128], strides = [1, 1]} : vector<64x128xf32> to vector<8x128xf32>
    %cst_13 = arith.constant dense<0.000000e+00> : vector<8x128xf32>
    %69 = tpu.matmul %67, %8, %cst_13 {dimension_numbers = #tpu.dot_dimension_numbers<[1], [0], [0], [1], [0, 0, 1, 1], [], []>} : vector<8x32xf32>, vector<32x128xf32>, vector<8x128xf32> -> vector<8x128xf32>
    %70 = arith.addf %68, %69 : vector<8x128xf32>
    %71 = vector.extract_strided_slice %70 {offsets = [0, 0], sizes = [8, 96], strides = [1, 1]} : vector<8x128xf32> to vector<8x96xf32>
    %72 = arith.negf %71 : vector<8x96xf32>
    %73 = math.exp %72 : vector<8x96xf32>
    %cst_14 = arith.constant 1.000000e+00 : f32
    %74 = vector.broadcast %cst_14 : f32 to vector<8x96xf32>
    %75 = arith.addf %74, %73 : vector<8x96xf32>
    %76 = arith.divf %74, %75 : vector<8x96xf32>
    %77 = vector.extract_strided_slice %76 {offsets = [0, 0], sizes = [8, 32], strides = [1, 1]} : vector<8x96xf32> to vector<8x32xf32>
    %78 = vector.extract_strided_slice %76 {offsets = [0, 32], sizes = [8, 32], strides = [1, 1]} : vector<8x96xf32> to vector<8x32xf32>
    %79 = vector.extract_strided_slice %76 {offsets = [0, 64], sizes = [8, 32], strides = [1, 1]} : vector<8x96xf32> to vector<8x32xf32>
    %80 = vector.extract_strided_slice %70 {offsets = [0, 96], sizes = [8, 32], strides = [1, 1]} : vector<8x128xf32> to vector<8x32xf32>
    %81 = math.tanh %80 : vector<8x32xf32>
    %82 = arith.mulf %78, %65 : vector<8x32xf32>
    %83 = arith.mulf %77, %81 : vector<8x32xf32>
    %84 = arith.addf %82, %83 : vector<8x32xf32>
    %85 = math.tanh %84 : vector<8x32xf32>
    %86 = arith.mulf %79, %85 : vector<8x32xf32>
    %87 = vector.extract_strided_slice %7 {offsets = [32, 0], sizes = [8, 128], strides = [1, 1]} : vector<64x128xf32> to vector<8x128xf32>
    %cst_15 = arith.constant dense<0.000000e+00> : vector<8x128xf32>
    %88 = tpu.matmul %86, %8, %cst_15 {dimension_numbers = #tpu.dot_dimension_numbers<[1], [0], [0], [1], [0, 0, 1, 1], [], []>} : vector<8x32xf32>, vector<32x128xf32>, vector<8x128xf32> -> vector<8x128xf32>
    %89 = arith.addf %87, %88 : vector<8x128xf32>
    %90 = vector.extract_strided_slice %89 {offsets = [0, 0], sizes = [8, 96], strides = [1, 1]} : vector<8x128xf32> to vector<8x96xf32>
    %91 = arith.negf %90 : vector<8x96xf32>
    %92 = math.exp %91 : vector<8x96xf32>
    %cst_16 = arith.constant 1.000000e+00 : f32
    %93 = vector.broadcast %cst_16 : f32 to vector<8x96xf32>
    %94 = arith.addf %93, %92 : vector<8x96xf32>
    %95 = arith.divf %93, %94 : vector<8x96xf32>
    %96 = vector.extract_strided_slice %95 {offsets = [0, 0], sizes = [8, 32], strides = [1, 1]} : vector<8x96xf32> to vector<8x32xf32>
    %97 = vector.extract_strided_slice %95 {offsets = [0, 32], sizes = [8, 32], strides = [1, 1]} : vector<8x96xf32> to vector<8x32xf32>
    %98 = vector.extract_strided_slice %95 {offsets = [0, 64], sizes = [8, 32], strides = [1, 1]} : vector<8x96xf32> to vector<8x32xf32>
    %99 = vector.extract_strided_slice %89 {offsets = [0, 96], sizes = [8, 32], strides = [1, 1]} : vector<8x128xf32> to vector<8x32xf32>
    %100 = math.tanh %99 : vector<8x32xf32>
    %101 = arith.mulf %97, %84 : vector<8x32xf32>
    %102 = arith.mulf %96, %100 : vector<8x32xf32>
    %103 = arith.addf %101, %102 : vector<8x32xf32>
    %104 = math.tanh %103 : vector<8x32xf32>
    %105 = arith.mulf %98, %104 : vector<8x32xf32>
    %106 = vector.extract_strided_slice %7 {offsets = [40, 0], sizes = [8, 128], strides = [1, 1]} : vector<64x128xf32> to vector<8x128xf32>
    %cst_17 = arith.constant dense<0.000000e+00> : vector<8x128xf32>
    %107 = tpu.matmul %105, %8, %cst_17 {dimension_numbers = #tpu.dot_dimension_numbers<[1], [0], [0], [1], [0, 0, 1, 1], [], []>} : vector<8x32xf32>, vector<32x128xf32>, vector<8x128xf32> -> vector<8x128xf32>
    %108 = arith.addf %106, %107 : vector<8x128xf32>
    %109 = vector.extract_strided_slice %108 {offsets = [0, 0], sizes = [8, 96], strides = [1, 1]} : vector<8x128xf32> to vector<8x96xf32>
    %110 = arith.negf %109 : vector<8x96xf32>
    %111 = math.exp %110 : vector<8x96xf32>
    %cst_18 = arith.constant 1.000000e+00 : f32
    %112 = vector.broadcast %cst_18 : f32 to vector<8x96xf32>
    %113 = arith.addf %112, %111 : vector<8x96xf32>
    %114 = arith.divf %112, %113 : vector<8x96xf32>
    %115 = vector.extract_strided_slice %114 {offsets = [0, 0], sizes = [8, 32], strides = [1, 1]} : vector<8x96xf32> to vector<8x32xf32>
    %116 = vector.extract_strided_slice %114 {offsets = [0, 32], sizes = [8, 32], strides = [1, 1]} : vector<8x96xf32> to vector<8x32xf32>
    %117 = vector.extract_strided_slice %114 {offsets = [0, 64], sizes = [8, 32], strides = [1, 1]} : vector<8x96xf32> to vector<8x32xf32>
    %118 = vector.extract_strided_slice %108 {offsets = [0, 96], sizes = [8, 32], strides = [1, 1]} : vector<8x128xf32> to vector<8x32xf32>
    %119 = math.tanh %118 : vector<8x32xf32>
    %120 = arith.mulf %116, %103 : vector<8x32xf32>
    %121 = arith.mulf %115, %119 : vector<8x32xf32>
    %122 = arith.addf %120, %121 : vector<8x32xf32>
    %123 = math.tanh %122 : vector<8x32xf32>
    %124 = arith.mulf %117, %123 : vector<8x32xf32>
    %125 = vector.extract_strided_slice %7 {offsets = [48, 0], sizes = [8, 128], strides = [1, 1]} : vector<64x128xf32> to vector<8x128xf32>
    %cst_19 = arith.constant dense<0.000000e+00> : vector<8x128xf32>
    %126 = tpu.matmul %124, %8, %cst_19 {dimension_numbers = #tpu.dot_dimension_numbers<[1], [0], [0], [1], [0, 0, 1, 1], [], []>} : vector<8x32xf32>, vector<32x128xf32>, vector<8x128xf32> -> vector<8x128xf32>
    %127 = arith.addf %125, %126 : vector<8x128xf32>
    %128 = vector.extract_strided_slice %127 {offsets = [0, 0], sizes = [8, 96], strides = [1, 1]} : vector<8x128xf32> to vector<8x96xf32>
    %129 = arith.negf %128 : vector<8x96xf32>
    %130 = math.exp %129 : vector<8x96xf32>
    %cst_20 = arith.constant 1.000000e+00 : f32
    %131 = vector.broadcast %cst_20 : f32 to vector<8x96xf32>
    %132 = arith.addf %131, %130 : vector<8x96xf32>
    %133 = arith.divf %131, %132 : vector<8x96xf32>
    %134 = vector.extract_strided_slice %133 {offsets = [0, 0], sizes = [8, 32], strides = [1, 1]} : vector<8x96xf32> to vector<8x32xf32>
    %135 = vector.extract_strided_slice %133 {offsets = [0, 32], sizes = [8, 32], strides = [1, 1]} : vector<8x96xf32> to vector<8x32xf32>
    %136 = vector.extract_strided_slice %133 {offsets = [0, 64], sizes = [8, 32], strides = [1, 1]} : vector<8x96xf32> to vector<8x32xf32>
    %137 = vector.extract_strided_slice %127 {offsets = [0, 96], sizes = [8, 32], strides = [1, 1]} : vector<8x128xf32> to vector<8x32xf32>
    %138 = math.tanh %137 : vector<8x32xf32>
    %139 = arith.mulf %135, %122 : vector<8x32xf32>
    %140 = arith.mulf %134, %138 : vector<8x32xf32>
    %141 = arith.addf %139, %140 : vector<8x32xf32>
    %142 = math.tanh %141 : vector<8x32xf32>
    %143 = arith.mulf %136, %142 : vector<8x32xf32>
    %144 = vector.extract_strided_slice %7 {offsets = [56, 0], sizes = [8, 128], strides = [1, 1]} : vector<64x128xf32> to vector<8x128xf32>
    %cst_21 = arith.constant dense<0.000000e+00> : vector<8x128xf32>
    %145 = tpu.matmul %143, %8, %cst_21 {dimension_numbers = #tpu.dot_dimension_numbers<[1], [0], [0], [1], [0, 0, 1, 1], [], []>} : vector<8x32xf32>, vector<32x128xf32>, vector<8x128xf32> -> vector<8x128xf32>
    %146 = arith.addf %144, %145 : vector<8x128xf32>
    %147 = vector.extract_strided_slice %146 {offsets = [0, 0], sizes = [8, 96], strides = [1, 1]} : vector<8x128xf32> to vector<8x96xf32>
    %148 = arith.negf %147 : vector<8x96xf32>
    %149 = math.exp %148 : vector<8x96xf32>
    %cst_22 = arith.constant 1.000000e+00 : f32
    %150 = vector.broadcast %cst_22 : f32 to vector<8x96xf32>
    %151 = arith.addf %150, %149 : vector<8x96xf32>
    %152 = arith.divf %150, %151 : vector<8x96xf32>
    %153 = vector.extract_strided_slice %152 {offsets = [0, 0], sizes = [8, 32], strides = [1, 1]} : vector<8x96xf32> to vector<8x32xf32>
    %154 = vector.extract_strided_slice %152 {offsets = [0, 32], sizes = [8, 32], strides = [1, 1]} : vector<8x96xf32> to vector<8x32xf32>
    %155 = vector.extract_strided_slice %152 {offsets = [0, 64], sizes = [8, 32], strides = [1, 1]} : vector<8x96xf32> to vector<8x32xf32>
    %156 = vector.extract_strided_slice %146 {offsets = [0, 96], sizes = [8, 32], strides = [1, 1]} : vector<8x128xf32> to vector<8x32xf32>
    %157 = math.tanh %156 : vector<8x32xf32>
    %158 = arith.mulf %154, %141 : vector<8x32xf32>
    %159 = arith.mulf %153, %157 : vector<8x32xf32>
    %160 = arith.addf %158, %159 : vector<8x32xf32>
    %161 = math.tanh %160 : vector<8x32xf32>
    %162 = arith.mulf %155, %161 : vector<8x32xf32>
    %c0_23 = arith.constant 0 : index
    %c0_24 = arith.constant 0 : index
    %163 = vector.load %arg3[%c0_23, %c0_24] : memref<32x128xf32, #tpu.memory_space<vmem>>, vector<32x128xf32>
    %cst_25 = arith.constant dense<0.000000e+00> : vector<8x128xf32>
    %164 = tpu.matmul %162, %163, %cst_25 {dimension_numbers = #tpu.dot_dimension_numbers<[1], [0], [0], [1], [0, 0, 1, 1], [], []>} : vector<8x32xf32>, vector<32x128xf32>, vector<8x128xf32> -> vector<8x128xf32>
    %c0_26 = arith.constant 0 : index
    %c0_27 = arith.constant 0 : index
    %165 = vector.load %arg4[%c0_26, %c0_27] : memref<1x128xf32, #tpu.memory_space<vmem>>, vector<1x128xf32>
    %166 = vector.broadcast %165 : vector<1x128xf32> to vector<8x128xf32>
    %167 = arith.addf %164, %166 : vector<8x128xf32>
    %c0_28 = arith.constant 0 : index
    %c0_29 = arith.constant 0 : index
    %168 = vector.load %arg5[%c0_28, %c0_29] : memref<8x128xf32, #tpu.memory_space<vmem>>, vector<8x128xf32>
    tpu.vector_store %arg5[%c0_28, %c0_29], %167 {strides = array<i32>} : memref<8x128xf32, #tpu.memory_space<vmem>>, vector<8x128xf32>,
    return
  }
}

</mosaic_0001>

<bundles_post_ra>
// kernel: number_prediction_forward.1
= control target key start
LH: loop header
LB: loop body
LE: loop exit
PB: predicated region body
PF: predicated region fallthrough
CT: control target
= control target key end

     0   :  { %10 = vsyncpa [#allocation3], 0  ;;  %s831_s21 = smov [#allocation2]   ;;  %s832_s23 = smov 128   ;;  %s1024_s0 = inlined_call_operand.vmem [shape: s32[64,1], index: 0, kind: input, shape index: {}]   ;;  %s1025_s1 = inlined_call_operand.hbm [shape: f32[128,128], index: 1, kind: input, shape index: {}]   ;;  %s1026_s2 = inlined_call_operand.vmem [shape: f32[32,128], index: 2, kind: input, shape index: {}]   ;;  %s1027_s3 = inlined_call_operand.vmem [shape: f32[32,128], index: 3, kind: input, shape index: {}]   ;;  %s1028_s4 = inlined_call_operand.vmem [shape: f32[1,128], index: 4, kind: input, shape index: {}]   ;;  %s1029_s5 = inlined_call_operand.vmem [shape: f32[8,128], index: 5, kind: output, shape index: {}]  }
   0x1   :  { %s17_s20 = sshll.u32 %s1025_s1, 4  ;;  %s19_s22 = sshll.u32 %s831_s21, 4  ;;  %s18_s20 = int_to_ptr.hbm [resolvable:$true] %s17_s20  ;;  %s20_s22 = int_to_ptr.vmem [resolvable:$true] %s19_s22 }
   0x2   :  { %s833_s24 = smov 8  }
   0x3   :  { %25 = dma.hbm_to_vmem [thread:$0]  %s18_s20, 2048, %s20_s22, [#allocation3], %s832_s23, %s832_s23, %s833_s24  }
   0x4   :  { %829 = dma.done.wait [#allocation3], 2048  }
   0x5   :  { %830 = vsyncadd [#allocation3], 4294965248  ;;  %v834_v0 = vmov 0   ;;  %v36_v1 = vld [vmem:[%s1024_s0] sm:$0xff]  ;;  %v109_v2 = vld [vmem:[#allocation2 + $0x78] sm:$0xff]  ;;  %v835_v22 = vmov 0.0   ;;  %v44_v23 = vlaneseq }
   0x6   :  { %737 = vset.pattern.permute.xlu0 %v834_v0  ;;  %738 = vset.pattern.permute.xlu2 %v834_v0  ;;  %v108_v3 = vld [vmem:[#allocation2 + $0x70] sm:$0xff]  ;;  %v107_v4 = vld [vmem:[#allocation2 + $0x68] sm:$0xff]  ;;  %v106_v5 = vld [vmem:[#allocation2 + $0x60] sm:$0xff]  ;;  %v836_v26 = vmov 1.0   ;;  %s838_s9 = smov 64   ;;  %vm155_vm5 = vcmask 261120  }
   0x7   :  { %739 = vset.pattern.permute.xlu1 %v834_v0  ;;  %47 = vperm.xlu0 %737, %v36_v1   ;;  %v878_v6 = vld [vmem:[%s1026_s2 + $0x18] sm:$0xff]  ;;  %v884_v7 = vld [vmem:[%s1026_s2 + $0x10] sm:$0xff]  ;;  %v889_v9 = vld [vmem:[%s1026_s2 + $0x8] sm:$0xff]  ;;  %v923_v24 = vand.u32 127, %v44_v23 }
   0x8   :  { %110 = vmatpush.msra.mxu0 %v109_v2  ;;  %171 = vmatpush.msra.mxu1 %v878_v6  ;;  %v105_v8 = vld [vmem:[#allocation2 + $0x58] sm:$0xff]  ;;  %v104_v10 = vld [vmem:[#allocation2 + $0x50] sm:$0xff]  ;;  %v103_v11 = vld [vmem:[#allocation2 + $0x48] sm:$0xff] }
   0x9   :  { %234 = vmatpush.msra.mxu2 %v878_v6  ;;  %297 = vmatpush.msra.mxu3 %v878_v6  ;;  %v102_v12 = vld [vmem:[#allocation2 + $0x40] sm:$0xff]  ;;  %v101_v13 = vld [vmem:[#allocation2 + $0x38] sm:$0xff]  ;;  %v100_v14 = vld [vmem:[#allocation2 + $0x30] sm:$0xff] }
   0xa   :  { %111 = vmatpush.msra.mxu0 %v108_v3  ;;  %172 = vmatpush.msra.mxu1 %v884_v7  ;;  %v99_v15 = vld [vmem:[#allocation2 + $0x28] sm:$0xff]  ;;  %v98_v16 = vld [vmem:[#allocation2 + $0x20] sm:$0xff]  ;;  %v97_v17 = vld [vmem:[#allocation2 + $0x18] sm:$0xff] }
   0xb   :  { %235 = vmatpush.msra.mxu2 %v884_v7  ;;  %298 = vmatpush.msra.mxu3 %v884_v7  ;;  %v96_v18 = vld [vmem:[#allocation2 + $0x10] sm:$0xff]  ;;  %v95_v19 = vld [vmem:[#allocation2 + $0x8] sm:$0xff]  ;;  %v94_v20 = vld [vmem:[#allocation2] sm:$0xff] }
   0xc   :  { %112 = vmatpush.msra.mxu0 %v107_v4  ;;  %173 = vmatpush.msra.mxu1 %v889_v9  ;;  %v902_v21 = vld [vmem:[%s1026_s2] sm:$0xff]  ;;  %s837_s2 = smov 32   ;;  %v37_v52 = vld [vmem:[%s1024_s0 + $0x8] sm:$0xff]  ;;  %v39_v23 = vld [vmem:[%s1024_s0 + $0x18] sm:$0xff] }
   0xd   :  { %236 = vmatpush.msra.mxu2 %v889_v9  ;;  %299 = vmatpush.msra.mxu3 %v889_v9 }
   0xe   :  { %113 = vmatpush.msra.mxu0 %v106_v5  ;;  %174 = vmatpush.msra.mxu1 %v902_v21 }
   0xf   :  { %175 = vmatmul.f32.vlgmr.msra.gmra.mxu1 %v835_v22  ;;  %237 = vmatpush.msra.mxu2 %v902_v21 }
  0x10   :  { %114 = vmatpush.msra.mxu0 %v105_v8  ;;  %300 = vmatpush.msra.mxu3 %v902_v21 }
  0x11   :  { %360 = vmatpush.msrb.mxu1 %v878_v6  ;;  %423 = vmatpush.msrb.mxu2 %v878_v6 }
  0x12   :  { %115 = vmatpush.msra.mxu0 %v104_v10  ;;  %486 = vmatpush.msrb.mxu3 %v878_v6 }
  0x13   :  { %361 = vmatpush.msrb.mxu1 %v884_v7  ;;  %424 = vmatpush.msrb.mxu2 %v884_v7 }
  0x14   :  { %116 = vmatpush.msra.mxu0 %v103_v11  ;;  %487 = vmatpush.msrb.mxu3 %v884_v7 }
  0x15   :  { %362 = vmatpush.msrb.mxu1 %v889_v9  ;;  %425 = vmatpush.msrb.mxu2 %v889_v9 }
  0x16   :  { %117 = vmatpush.msra.mxu0 %v102_v12  ;;  %488 = vmatpush.msrb.mxu3 %v889_v9 }
  0x17   :  { %363 = vmatpush.msrb.mxu1 %v902_v21  ;;  %426 = vmatpush.msrb.mxu2 %v902_v21 }
  0x18   :  { %118 = vmatpush.msra.mxu0 %v101_v13  ;;  %489 = vmatpush.msrb.mxu3 %v902_v21 }
  0x19   :  { %549 = vmatpush.msra.mxu1 %v878_v6 }
  0x1a   :  { %119 = vmatpush.msra.mxu0 %v100_v14  ;;  %v38_v14 = vld [vmem:[%s1024_s0 + $0x10] sm:$0xff] }
  0x1b   :  { %550 = vmatpush.msra.mxu1 %v884_v7 }
  0x1c   :  { %120 = vmatpush.msra.mxu0 %v99_v15 }
  0x1d   :  { %551 = vmatpush.msra.mxu1 %v889_v9 }
  0x1e   :  { %121 = vmatpush.msra.mxu0 %v98_v16 }
  0x1f   :  { %552 = vmatpush.msra.mxu1 %v902_v21 }
  0x20   :  { %122 = vmatpush.msra.mxu0 %v97_v17 }
  0x22   :  { %123 = vmatpush.msra.mxu0 %v96_v18 }
  0x24   :  { %124 = vmatpush.msra.mxu0 %v95_v19 }
  0x26   :  { %125 = vmatpush.msra.mxu0 %v94_v20 }
  0x79   :  { %v48_v25 = vpop.permute.xlu0 %47 }
  0x7a   :  { %vm70_vm0 = vcmp.eq.s32.totalorder %v923_v24, %v48_v25 }
  0x7b   :  { %705 = vmatmul.msk.f32.vlgmr.msra.gmra.mxu0 %vm70_vm0, %v836_v26 }
  0x8c   :  { %v176_v27 = vpop.f32.mrf.mxu1 }
  0xf8   :  { %v127_v28 = vpop.f32.mrf.mxu0 }
  0xf9   :  { %v179_v29 = vadd.f32 %v176_v27, %v127_v28 }
  0xfb   :  { %741 = vtanh.f32 %v179_v29  ;;  %v713_v31 = vmul.f32 -1.442695, %v179_v29 }
  0xfd   :  { %743 = vpow2.f32 %v713_v31 }
 0x101   :  { %v742_v30 = vpop.eup %741 }
 0x102   :  { %202 = vrot.lane.b32.xlu0 %v742_v30, %s837_s2 }
 0x103   :  { %v744_v32 = vpop.eup %743 }
 0x104   :  { %v183_v33 = vadd.f32 1.0, %v744_v32 }
 0x106   :  { %745 = vrcp.f32 %v183_v33  ;;  %v195_v39 = vand.u32 2147483648, %v183_v33  ;;  %vm189_vm2 = vweird.f32 %v183_v33  ;;  %v193_v40 = vand.u32 2147483647, %v183_v33 }
 0x108   :  { %v196_v42 = vor.u32 1.1754944e-38, %v195_v39  ;;  %vm194_vm4 = vcmp.eq.f32.partialorder %v193_v40, 8.507059e+37 }
 0x10c   :  { %v746_v34 = vpop.eup %745 }
 0x10d   :  { %v185_v35 = vmul.f32 %v746_v34, %v183_v33  ;;  %vm190_vm1 = vweird.f32 %v746_v34 }
 0x10e   :  { %vm191_vm3 = vmor %vm189_vm2, %vm190_vm1 }
 0x10f   :  { %v186_v36 = vsub.f32 1.0, %v185_v35 }
 0x111   :  { %v187_v37 = vmul.f32 %v746_v34, %v186_v36 }
 0x113   :  { %v188_v38 = vadd.f32 %v746_v34, %v187_v37 }
 0x115   :  { %v192_v41 = vsel %vm191_vm3, %v746_v34, %v188_v38 }
 0x116   :  { %v197_v44 = vsel %vm194_vm4, %v196_v42, %v192_v41 }
 0x117   :  { %v200_v46 = vmul.f32 0.0, %v197_v44 }
 0x174   :  { %v203_v43 = vpop.permute.xlu0 %202 }
 0x175   :  { %v205_v45 = vmul.f32 %v203_v43, %v197_v44 }
 0x177   :  { %207 = vrot.lane.b32.xlu1 %v205_v45, %s837_s2 }
 0x1e9   :  { %v208_v47 = vpop.permute.xlu1 %207 }
 0x1ea   :  { %v210_v48 = vadd.f32 %v208_v47, %v200_v46 }
 0x1ec   :  { %747 = vtanh.f32 %v210_v48 }
 0x1f2   :  { %v748_v49 = vpop.eup %747 }
 0x1f3   :  { %213 = vrot.lane.b32.xlu1 %v748_v49, %s837_s2 }
 0x265   :  { %v214_v50 = vpop.permute.xlu1 %213 }
 0x266   :  { %v216_v51 = vmul.f32 %v214_v50, %v197_v44 }
 0x268   :  { %218 = vrot.lane.b32.xlu2 %v216_v51, %s838_s9 }
 0x270   :  { %50 = vperm.xlu2 %738, %v37_v52  }
 0x2c2   :  { %v219_v53 = vpop.permute.xlu2 %218 }
 0x2c3   :  { %714 = vmatmul.msk.f32.vlgmr.msra.gmra.mxu2 %vm155_vm5, %v219_v53 }
 0x2c4   :  { %612 = vmatpush.msra.mxu2 %v878_v6 }
 0x2c6   :  { %613 = vmatpush.msra.mxu2 %v884_v7 }
 0x2c8   :  { %614 = vmatpush.msra.mxu2 %v889_v9 }
 0x2ca   :  { %v51_v54 = vpop.permute.xlu2 %50  ;;  %615 = vmatpush.msra.mxu2 %v902_v21 }
 0x2cb   :  { %vm71_vm6 = vcmp.eq.s32.totalorder %v923_v24, %v51_v54 }
 0x2cc   :  { %706 = vmatmul.msk.f32.gmra.mxu0 %vm71_vm6, %v836_v26 }
 0x346   :  { %v239_v55 = vpop.f32.mrf.mxu2 }
 0x349   :  { %v130_v56 = vpop.f32.mrf.mxu0 }
 0x34a   :  { %v242_v57 = vadd.f32 %v239_v55, %v130_v56 }
 0x34c   :  { %749 = vtanh.f32 %v242_v57  ;;  %v715_v59 = vmul.f32 -1.442695, %v242_v57 }
 0x34e   :  { %751 = vpow2.f32 %v715_v59 }
 0x352   :  { %v750_v58 = vpop.eup %749 }
 0x353   :  { %265 = vrot.lane.b32.xlu0 %v750_v58, %s837_s2 }
 0x354   :  { %v752_v60 = vpop.eup %751 }
 0x355   :  { %v246_v61 = vadd.f32 1.0, %v752_v60 }
 0x357   :  { %753 = vrcp.f32 %v246_v61  ;;  %v258_v3 = vand.u32 2147483648, %v246_v61  ;;  %vm252_vm8 = vweird.f32 %v246_v61  ;;  %v256_v4 = vand.u32 2147483647, %v246_v61 }
 0x359   :  { %v259_v6 = vor.u32 1.1754944e-38, %v258_v3  ;;  %vm257_vm10 = vcmp.eq.f32.partialorder %v256_v4, 8.507059e+37  ;;  %v40_v4 = vld [vmem:[%s1024_s0 + $0x20] sm:$0xff] }
 0x35d   :  { %v754_v62 = vpop.eup %753 }
 0x35e   :  { %v248_v63 = vmul.f32 %v754_v62, %v246_v61  ;;  %vm253_vm7 = vweird.f32 %v754_v62 }
 0x35f   :  { %vm254_vm9 = vmor %vm252_vm8, %vm253_vm7 }
 0x360   :  { %v249_v0 = vsub.f32 1.0, %v248_v63 }
 0x362   :  { %v250_v1 = vmul.f32 %v754_v62, %v249_v0 }
 0x364   :  { %v251_v2 = vadd.f32 %v754_v62, %v250_v1 }
 0x366   :  { %v255_v5 = vsel %vm254_vm9, %v754_v62, %v251_v2 }
 0x367   :  { %v260_v8 = vsel %vm257_vm10, %v259_v6, %v255_v5 }
 0x368   :  { %v263_v10 = vmul.f32 %v260_v8, %v210_v48 }
 0x3c5   :  { %v266_v7 = vpop.permute.xlu0 %265 }
 0x3c6   :  { %v268_v9 = vmul.f32 %v266_v7, %v260_v8 }
 0x3c8   :  { %270 = vrot.lane.b32.xlu1 %v268_v9, %s837_s2 }
 0x3d0   :  { %53 = vperm.xlu1 %739, %v38_v14  }
 0x43a   :  { %v271_v11 = vpop.permute.xlu1 %270 }
 0x43b   :  { %v273_v12 = vadd.f32 %v271_v11, %v263_v10 }
 0x43d   :  { %755 = vtanh.f32 %v273_v12 }
 0x442   :  { %v54_v17 = vpop.permute.xlu1 %53 }
 0x443   :  { %v756_v13 = vpop.eup %755  ;;  %vm72_vm11 = vcmp.eq.s32.totalorder %v923_v24, %v54_v17 }
 0x444   :  { %276 = vrot.lane.b32.xlu2 %v756_v13, %s837_s2  ;;  %707 = vmatmul.msk.f32.gmra.mxu0 %vm72_vm11, %v836_v26 }
 0x49e   :  { %v277_v15 = vpop.permute.xlu2 %276 }
 0x49f   :  { %v279_v16 = vmul.f32 %v277_v15, %v260_v8 }
 0x4a1   :  { %281 = vrot.lane.b32.xlu0 %v279_v16, %s838_s9 }
 0x4c1   :  { %v133_v19 = vpop.f32.mrf.mxu0 }
 0x513   :  { %v282_v18 = vpop.permute.xlu0 %281 }
 0x514   :  { %716 = vmatmul.msk.f32.vlgmr.msra.gmra.mxu3 %vm155_vm5, %v282_v18 }
 0x597   :  { %v302_v20 = vpop.f32.mrf.mxu3 }
 0x598   :  { %v305_v21 = vadd.f32 %v302_v20, %v133_v19 }
 0x59a   :  { %757 = vtanh.f32 %v305_v21  ;;  %v717_v25 = vmul.f32 -1.442695, %v305_v21 }
 0x59c   :  { %759 = vpow2.f32 %v717_v25 }
 0x5a0   :  { %v758_v22 = vpop.eup %757 }
 0x5a1   :  { %328 = vrot.lane.b32.xlu2 %v758_v22, %s837_s2 }
 0x5a2   :  { %v760_v27 = vpop.eup %759 }
 0x5a3   :  { %v309_v28 = vadd.f32 1.0, %v760_v27 }
 0x5a5   :  { %761 = vrcp.f32 %v309_v28  ;;  %v321_v34 = vand.u32 2147483648, %v309_v28  ;;  %vm315_vm13 = vweird.f32 %v309_v28  ;;  %v319_v35 = vand.u32 2147483647, %v309_v28 }
 0x5a7   :  { %v322_v37 = vor.u32 1.1754944e-38, %v321_v34  ;;  %vm320_vm15 = vcmp.eq.f32.partialorder %v319_v35, 8.507059e+37  ;;  %v41_v34 = vld [vmem:[%s1024_s0 + $0x28] sm:$0xff] }
 0x5a9   :  { %56 = vperm.xlu2 %738, %v39_v23  }
 0x5ab   :  { %v762_v29 = vpop.eup %761 }
 0x5ac   :  { %v311_v30 = vmul.f32 %v762_v29, %v309_v28  ;;  %vm316_vm12 = vweird.f32 %v762_v29 }
 0x5ad   :  { %vm317_vm14 = vmor %vm315_vm13, %vm316_vm12 }
 0x5ae   :  { %v312_v31 = vsub.f32 1.0, %v311_v30 }
 0x5b0   :  { %v313_v32 = vmul.f32 %v762_v29, %v312_v31 }
 0x5b2   :  { %v314_v33 = vadd.f32 %v762_v29, %v313_v32 }
 0x5b4   :  { %v318_v36 = vsel %vm317_vm14, %v762_v29, %v314_v33 }
 0x5b5   :  { %v323_v39 = vsel %vm320_vm15, %v322_v37, %v318_v36 }
 0x5b6   :  { %v326_v42 = vmul.f32 %v323_v39, %v273_v12 }
 0x5fb   :  { %v329_v38 = vpop.permute.xlu2 %328 }
 0x5fc   :  { %v331_v40 = vmul.f32 %v329_v38, %v323_v39 }
 0x5fe   :  { %333 = vrot.lane.b32.xlu0 %v331_v40, %s837_s2 }
 0x603   :  { %v57_v41 = vpop.permute.xlu2 %56 }
 0x604   :  { %vm73_vm0 = vcmp.eq.s32.totalorder %v923_v24, %v57_v41 }
 0x605   :  { %708 = vmatmul.msk.f32.gmra.mxu0 %vm73_vm0, %v836_v26 }
 0x670   :  { %v334_v43 = vpop.permute.xlu0 %333 }
 0x671   :  { %v336_v44 = vadd.f32 %v334_v43, %v326_v42 }
 0x673   :  { %763 = vtanh.f32 %v336_v44 }
 0x679   :  { %v764_v45 = vpop.eup %763 }
 0x67a   :  { %339 = vrot.lane.b32.xlu1 %v764_v45, %s837_s2 }
 0x682   :  { %v136_v49 = vpop.f32.mrf.mxu0 }
 0x6ec   :  { %v340_v46 = vpop.permute.xlu1 %339 }
 0x6ed   :  { %v342_v47 = vmul.f32 %v340_v46, %v323_v39 }
 0x6ef   :  { %344 = vrot.lane.b32.xlu0 %v342_v47, %s838_s9  ;;  %v42_v47 = vld [vmem:[%s1024_s0 + $0x30] sm:$0xff] }
 0x761   :  { %v345_v48 = vpop.permute.xlu0 %344 }
 0x762   :  { %718 = vmatmul.msk.f32.vlgmr.msrb.gmra.mxu1 %vm155_vm5, %v345_v48 }
 0x7df   :  { %v365_v50 = vpop.f32.mrf.mxu1 }
 0x7e0   :  { %v368_v51 = vadd.f32 %v365_v50, %v136_v49 }
 0x7e2   :  { %765 = vtanh.f32 %v368_v51  ;;  %v719_v53 = vmul.f32 -1.442695, %v368_v51 }
 0x7e4   :  { %767 = vpow2.f32 %v719_v53 }
 0x7e8   :  { %v766_v52 = vpop.eup %765 }
 0x7e9   :  { %391 = vrot.lane.b32.xlu1 %v766_v52, %s837_s2 }
 0x7ea   :  { %v768_v54 = vpop.eup %767 }
 0x7eb   :  { %v372_v55 = vadd.f32 1.0, %v768_v54 }
 0x7ed   :  { %769 = vrcp.f32 %v372_v55  ;;  %v384_v61 = vand.u32 2147483648, %v372_v55  ;;  %vm378_vm2 = vweird.f32 %v372_v55  ;;  %v382_v62 = vand.u32 2147483647, %v372_v55 }
 0x7ef   :  { %v385_v0 = vor.u32 1.1754944e-38, %v384_v61  ;;  %vm383_vm4 = vcmp.eq.f32.partialorder %v382_v62, 8.507059e+37 }
 0x7f3   :  { %v770_v56 = vpop.eup %769 }
 0x7f4   :  { %v374_v57 = vmul.f32 %v770_v56, %v372_v55  ;;  %vm379_vm1 = vweird.f32 %v770_v56 }
 0x7f5   :  { %vm380_vm3 = vmor %vm378_vm2, %vm379_vm1 }
 0x7f6   :  { %v375_v58 = vsub.f32 1.0, %v374_v57 }
 0x7f8   :  { %v376_v59 = vmul.f32 %v770_v56, %v375_v58 }
 0x7fa   :  { %v377_v60 = vadd.f32 %v770_v56, %v376_v59 }
 0x7fc   :  { %v381_v63 = vsel %vm380_vm3, %v770_v56, %v377_v60 }
 0x7fd   :  { %v386_v2 = vsel %vm383_vm4, %v385_v0, %v381_v63 }
 0x7fe   :  { %v389_v5 = vmul.f32 %v386_v2, %v336_v44 }
 0x85b   :  { %v392_v1 = vpop.permute.xlu1 %391 }
 0x85c   :  { %v394_v3 = vmul.f32 %v392_v1, %v386_v2 }
 0x85e   :  { %396 = vrot.lane.b32.xlu2 %v394_v3, %s837_s2 }
 0x866   :  { %59 = vperm.xlu2 %738, %v40_v4  }
 0x8b8   :  { %v397_v6 = vpop.permute.xlu2 %396 }
 0x8b9   :  { %v399_v7 = vadd.f32 %v397_v6, %v389_v5 }
 0x8bb   :  { %771 = vtanh.f32 %v399_v7 }
 0x8c0   :  { %v60_v8 = vpop.permute.xlu2 %59 }
 0x8c1   :  { %v772_v9 = vpop.eup %771  ;;  %vm74_vm6 = vcmp.eq.s32.totalorder %v923_v24, %v60_v8 }
 0x8c2   :  { %709 = vmatmul.msk.f32.gmra.mxu0 %vm74_vm6, %v836_v26  ;;  %402 = vrot.lane.b32.xlu0 %v772_v9, %s837_s2 }
 0x934   :  { %v403_v10 = vpop.permute.xlu0 %402 }
 0x935   :  { %v405_v11 = vmul.f32 %v403_v10, %v386_v2 }
 0x937   :  { %407 = vrot.lane.b32.xlu1 %v405_v11, %s838_s9 }
 0x93f   :  { %v139_v13 = vpop.f32.mrf.mxu0 }
 0x9a9   :  { %v408_v12 = vpop.permute.xlu1 %407 }
 0x9aa   :  { %720 = vmatmul.msk.f32.vlgmr.msrb.gmra.mxu2 %vm155_vm5, %v408_v12 }
 0xa2d   :  { %v428_v14 = vpop.f32.mrf.mxu2 }
 0xa2e   :  { %v431_v15 = vadd.f32 %v428_v14, %v139_v13 }
 0xa30   :  { %773 = vtanh.f32 %v431_v15  ;;  %v721_v17 = vmul.f32 -1.442695, %v431_v15 }
 0xa32   :  { %775 = vpow2.f32 %v721_v17 }
 0xa36   :  { %v774_v16 = vpop.eup %773 }
 0xa37   :  { %454 = vrot.lane.b32.xlu0 %v774_v16, %s837_s2 }
 0xa38   :  { %v776_v18 = vpop.eup %775 }
 0xa39   :  { %v435_v19 = vadd.f32 1.0, %v776_v18 }
 0xa3b   :  { %777 = vrcp.f32 %v435_v19  ;;  %v447_v27 = vand.u32 2147483648, %v435_v19  ;;  %vm441_vm8 = vweird.f32 %v435_v19  ;;  %v445_v28 = vand.u32 2147483647, %v435_v19 }
 0xa3d   :  { %v448_v30 = vor.u32 1.1754944e-38, %v447_v27  ;;  %vm446_vm10 = vcmp.eq.f32.partialorder %v445_v28, 8.507059e+37  ;;  %v43_v28 = vld [vmem:[%s1024_s0 + $0x38] sm:$0xff] }
 0xa41   :  { %v778_v20 = vpop.eup %777 }
 0xa42   :  { %v437_v21 = vmul.f32 %v778_v20, %v435_v19  ;;  %vm442_vm7 = vweird.f32 %v778_v20 }
 0xa43   :  { %vm443_vm9 = vmor %vm441_vm8, %vm442_vm7 }
 0xa44   :  { %v438_v22 = vsub.f32 1.0, %v437_v21 }
 0xa46   :  { %v439_v23 = vmul.f32 %v778_v20, %v438_v22 }
 0xa48   :  { %v440_v25 = vadd.f32 %v778_v20, %v439_v23 }
 0xa4a   :  { %v444_v29 = vsel %vm443_vm9, %v778_v20, %v440_v25 }
 0xa4b   :  { %v449_v32 = vsel %vm446_vm10, %v448_v30, %v444_v29 }
 0xa4c   :  { %v452_v35 = vmul.f32 %v449_v32, %v399_v7 }
 0xaa9   :  { %v455_v31 = vpop.permute.xlu0 %454 }
 0xaaa   :  { %v457_v33 = vmul.f32 %v455_v31, %v449_v32 }
 0xaac   :  { %459 = vrot.lane.b32.xlu1 %v457_v33, %s837_s2 }
 0xab4   :  { %62 = vperm.xlu1 %739, %v41_v34  }
 0xb1e   :  { %v460_v36 = vpop.permute.xlu1 %459 }
 0xb1f   :  { %v462_v37 = vadd.f32 %v460_v36, %v452_v35 }
 0xb21   :  { %779 = vtanh.f32 %v462_v37 }
 0xb26   :  { %v63_v38 = vpop.permute.xlu1 %62 }
 0xb27   :  { %v780_v39 = vpop.eup %779  ;;  %vm75_vm11 = vcmp.eq.s32.totalorder %v923_v24, %v63_v38 }
 0xb28   :  { %710 = vmatmul.msk.f32.gmra.mxu0 %vm75_vm11, %v836_v26  ;;  %465 = vrot.lane.b32.xlu2 %v780_v39, %s837_s2 }
 0xb82   :  { %v466_v40 = vpop.permute.xlu2 %465 }
 0xb83   :  { %v468_v41 = vmul.f32 %v466_v40, %v449_v32 }
 0xb85   :  { %470 = vrot.lane.b32.xlu0 %v468_v41, %s838_s9 }
 0xba5   :  { %v142_v43 = vpop.f32.mrf.mxu0 }
 0xbf7   :  { %v471_v42 = vpop.permute.xlu0 %470 }
 0xbf8   :  { %722 = vmatmul.msk.f32.vlgmr.msrb.gmra.mxu3 %vm155_vm5, %v471_v42 }
 0xc7b   :  { %v491_v44 = vpop.f32.mrf.mxu3 }
 0xc7c   :  { %v494_v45 = vadd.f32 %v491_v44, %v142_v43 }
 0xc7e   :  { %781 = vtanh.f32 %v494_v45  ;;  %v723_v48 = vmul.f32 -1.442695, %v494_v45 }
 0xc80   :  { %783 = vpow2.f32 %v723_v48 }
 0xc84   :  { %v782_v46 = vpop.eup %781 }
 0xc85   :  { %517 = vrot.lane.b32.xlu2 %v782_v46, %s837_s2 }
 0xc86   :  { %v784_v49 = vpop.eup %783 }
 0xc87   :  { %v498_v50 = vadd.f32 1.0, %v784_v49 }
 0xc89   :  { %785 = vrcp.f32 %v498_v50  ;;  %v510_v56 = vand.u32 2147483648, %v498_v50  ;;  %vm504_vm13 = vweird.f32 %v498_v50  ;;  %v508_v57 = vand.u32 2147483647, %v498_v50 }
 0xc8b   :  { %v511_v59 = vor.u32 1.1754944e-38, %v510_v56  ;;  %vm509_vm15 = vcmp.eq.f32.partialorder %v508_v57, 8.507059e+37 }
 0xc8d   :  { %65 = vperm.xlu2 %738, %v42_v47  }
 0xc8f   :  { %v786_v51 = vpop.eup %785 }
 0xc90   :  { %v500_v52 = vmul.f32 %v786_v51, %v498_v50  ;;  %vm505_vm12 = vweird.f32 %v786_v51 }
 0xc91   :  { %vm506_vm14 = vmor %vm504_vm13, %vm505_vm12 }
 0xc92   :  { %v501_v53 = vsub.f32 1.0, %v500_v52 }
 0xc94   :  { %v502_v54 = vmul.f32 %v786_v51, %v501_v53 }
 0xc96   :  { %v503_v55 = vadd.f32 %v786_v51, %v502_v54 }
 0xc98   :  { %v507_v58 = vsel %vm506_vm14, %v786_v51, %v503_v55 }
 0xc99   :  { %v512_v61 = vsel %vm509_vm15, %v511_v59, %v507_v58  ;;  %v661_v58 = vld [vmem:[%s1027_s3 + $0x18] sm:$0xff]  ;;  %v660_v59 = vld [vmem:[%s1027_s3 + $0x10] sm:$0xff] }
 0xc9a   :  { %v515_v0 = vmul.f32 %v512_v61, %v462_v37  ;;  %683 = vmatpush.msra.mxu3 %v661_v58 }
 0xc9c   :  { %684 = vmatpush.msra.mxu3 %v660_v59 }
 0xcdf   :  { %v518_v60 = vpop.permute.xlu2 %517 }
 0xce0   :  { %v520_v62 = vmul.f32 %v518_v60, %v512_v61  ;;  %v659_v60 = vld [vmem:[%s1027_s3 + $0x8] sm:$0xff] }
 0xce1   :  { %685 = vmatpush.msra.mxu3 %v659_v60 }
 0xce2   :  { %522 = vrot.lane.b32.xlu0 %v520_v62, %s837_s2 }
 0xce7   :  { %v66_v63 = vpop.permute.xlu2 %65 }
 0xce8   :  { %vm76_vm0 = vcmp.eq.s32.totalorder %v923_v24, %v66_v63 }
 0xce9   :  { %711 = vmatmul.msk.f32.gmra.mxu0 %vm76_vm0, %v836_v26 }
 0xd54   :  { %v523_v1 = vpop.permute.xlu0 %522 }
 0xd55   :  { %v525_v2 = vadd.f32 %v523_v1, %v515_v0  ;;  %v740_v1 = vld [vmem:[%s1028_s4] ss:$0 sm:$0xff] }
 0xd57   :  { %787 = vtanh.f32 %v525_v2 }
 0xd5d   :  { %v788_v3 = vpop.eup %787 }
 0xd5e   :  { %528 = vrot.lane.b32.xlu1 %v788_v3, %s837_s2 }
 0xd66   :  { %v145_v7 = vpop.f32.mrf.mxu0 }
 0xdd0   :  { %v529_v4 = vpop.permute.xlu1 %528 }
 0xdd1   :  { %v531_v5 = vmul.f32 %v529_v4, %v512_v61  ;;  %v658_v61 = vld [vmem:[%s1027_s3] sm:$0xff] }
 0xdd2   :  { %686 = vmatpush.msra.mxu3 %v658_v61 }
 0xdd3   :  { %533 = vrot.lane.b32.xlu0 %v531_v5, %s838_s9 }
 0xe45   :  { %v534_v6 = vpop.permute.xlu0 %533 }
 0xe46   :  { %724 = vmatmul.msk.f32.vlgmr.msra.gmra.mxu1 %vm155_vm5, %v534_v6 }
 0xec3   :  { %v554_v8 = vpop.f32.mrf.mxu1 }
 0xec4   :  { %v557_v9 = vadd.f32 %v554_v8, %v145_v7 }
 0xec6   :  { %789 = vtanh.f32 %v557_v9  ;;  %v725_v11 = vmul.f32 -1.442695, %v557_v9 }
 0xec8   :  { %791 = vpow2.f32 %v725_v11 }
 0xecc   :  { %v790_v10 = vpop.eup %789 }
 0xecd   :  { %580 = vrot.lane.b32.xlu1 %v790_v10, %s837_s2 }
 0xece   :  { %v792_v12 = vpop.eup %791 }
 0xecf   :  { %v561_v13 = vadd.f32 1.0, %v792_v12 }
 0xed1   :  { %793 = vrcp.f32 %v561_v13  ;;  %v573_v19 = vand.u32 2147483648, %v561_v13  ;;  %vm567_vm2 = vweird.f32 %v561_v13  ;;  %v571_v20 = vand.u32 2147483647, %v561_v13 }
 0xed3   :  { %v574_v22 = vor.u32 1.1754944e-38, %v573_v19  ;;  %vm572_vm4 = vcmp.eq.f32.partialorder %v571_v20, 8.507059e+37 }
 0xed7   :  { %v794_v14 = vpop.eup %793 }
 0xed8   :  { %v563_v15 = vmul.f32 %v794_v14, %v561_v13  ;;  %vm568_vm1 = vweird.f32 %v794_v14 }
 0xed9   :  { %vm569_vm3 = vmor %vm567_vm2, %vm568_vm1 }
 0xeda   :  { %v564_v16 = vsub.f32 1.0, %v563_v15 }
 0xedc   :  { %v565_v17 = vmul.f32 %v794_v14, %v564_v16 }
 0xede   :  { %v566_v18 = vadd.f32 %v794_v14, %v565_v17 }
 0xee0   :  { %v570_v21 = vsel %vm569_vm3, %v794_v14, %v566_v18 }
 0xee1   :  { %v575_v25 = vsel %vm572_vm4, %v574_v22, %v570_v21 }
 0xee2   :  { %v578_v29 = vmul.f32 %v575_v25, %v525_v2 }
 0xf3f   :  { %v581_v23 = vpop.permute.xlu1 %580 }
 0xf40   :  { %v583_v27 = vmul.f32 %v581_v23, %v575_v25 }
 0xf42   :  { %585 = vrot.lane.b32.xlu2 %v583_v27, %s837_s2 }
 0xf4a   :  { %68 = vperm.xlu2 %738, %v43_v28  }
 0xf9c   :  { %v586_v30 = vpop.permute.xlu2 %585 }
 0xf9d   :  { %v588_v31 = vadd.f32 %v586_v30, %v578_v29 }
 0xf9f   :  { %795 = vtanh.f32 %v588_v31 }
 0xfa4   :  { %v69_v32 = vpop.permute.xlu2 %68 }
 0xfa5   :  { %v796_v33 = vpop.eup %795  ;;  %vm77_vm6 = vcmp.eq.s32.totalorder %v923_v24, %v69_v32 }
 0xfa6   :  { %712 = vmatmul.msk.f32.gmra.mxu0 %vm77_vm6, %v836_v26  ;;  %591 = vrot.lane.b32.xlu0 %v796_v33, %s837_s2 }
0x1018   :  { %v592_v34 = vpop.permute.xlu0 %591 }
0x1019   :  { %v594_v35 = vmul.f32 %v592_v34, %v575_v25 }
0x101b   :  { %596 = vrot.lane.b32.xlu1 %v594_v35, %s838_s9 }
0x1023   :  { %v148_v37 = vpop.f32.mrf.mxu0 }
0x108d   :  { %v597_v36 = vpop.permute.xlu1 %596 }
0x108e   :  { %726 = vmatmul.msk.f32.vlgmr.msra.gmra.mxu2 %vm155_vm5, %v597_v36 }
0x1111   :  { %v617_v38 = vpop.f32.mrf.mxu2 }
0x1112   :  { %v620_v39 = vadd.f32 %v617_v38, %v148_v37 }
0x1114   :  { %797 = vtanh.f32 %v620_v39  ;;  %v727_v41 = vmul.f32 -1.442695, %v620_v39 }
0x1116   :  { %799 = vpow2.f32 %v727_v41 }
0x111a   :  { %v798_v40 = vpop.eup %797 }
0x111b   :  { %643 = vrot.lane.b32.xlu0 %v798_v40, %s837_s2 }
0x111c   :  { %v800_v24 = vpop.eup %799 }
0x111d   :  { %v624_v26 = vadd.f32 1.0, %v800_v24 }
0x111f   :  { %801 = vrcp.f32 %v624_v26  ;;  %v636_v47 = vand.u32 2147483648, %v624_v26  ;;  %vm630_vm8 = vweird.f32 %v624_v26  ;;  %v634_v48 = vand.u32 2147483647, %v624_v26 }
0x1121   :  { %v637_v50 = vor.u32 1.1754944e-38, %v636_v47  ;;  %vm635_vm10 = vcmp.eq.f32.partialorder %v634_v48, 8.507059e+37 }
0x1125   :  { %v802_v42 = vpop.eup %801 }
0x1126   :  { %v626_v43 = vmul.f32 %v802_v42, %v624_v26  ;;  %vm631_vm7 = vweird.f32 %v802_v42 }
0x1127   :  { %vm632_vm9 = vmor %vm630_vm8, %vm631_vm7 }
0x1128   :  { %v627_v44 = vsub.f32 1.0, %v626_v43 }
0x112a   :  { %v628_v45 = vmul.f32 %v802_v42, %v627_v44 }
0x112c   :  { %v629_v46 = vadd.f32 %v802_v42, %v628_v45 }
0x112e   :  { %v633_v49 = vsel %vm632_vm9, %v802_v42, %v629_v46 }
0x112f   :  { %v638_v52 = vsel %vm635_vm10, %v637_v50, %v633_v49 }
0x1130   :  { %v641_v54 = vmul.f32 %v638_v52, %v588_v31 }
0x118d   :  { %v644_v51 = vpop.permute.xlu0 %643 }
0x118e   :  { %v646_v53 = vmul.f32 %v644_v51, %v638_v52 }
0x1190   :  { %648 = vrot.lane.b32.xlu1 %v646_v53, %s837_s2 }
0x1202   :  { %v649_v55 = vpop.permute.xlu1 %648 }
0x1203   :  { %v651_v56 = vadd.f32 %v649_v55, %v641_v54 }
0x1205   :  { %803 = vtanh.f32 %v651_v56 }
0x120b   :  { %v804_v57 = vpop.eup %803 }
0x120c   :  { %654 = vrot.lane.b32.xlu2 %v804_v57, %s837_s2 }
0x1266   :  { %v655_v62 = vpop.permute.xlu2 %654 }
0x1267   :  { %v657_v63 = vmul.f32 %v655_v62, %v638_v52 }
0x1269   :  { %667 = vrot.lane.b32.xlu0 %v657_v63, %s838_s9 }
0x12db   :  { %v668_v0 = vpop.permute.xlu0 %667 }
0x12dc   :  { %728 = vmatmul.msk.f32.vlgmr.msra.gmra.mxu3 %vm155_vm5, %v668_v0 }
0x135f   :  { %v688_v2 = vpop.f32.mrf.mxu3 }
0x1360   :  { %v689_v3 = vadd.f32 %v740_v1, %v688_v2 }
0x1362   :  { %691 = vst [vmem:[%s1029_s5] sm:$0xff] %v689_v3 }
0x1363   :  { %696 = vsyncpa [#allocation3], 1 }

</bundles_post_ra>
